<compile_context>
chip_gen: v7x
topology: tpu7x:2x2x1
jax: 0.10.0
libtpu: 0.0.40
codegen_flags: <defaults>
</compile_context>

<pallas_src>
import numpy as np
import jax
import jax.numpy as jnp
from jax import lax
from jax.experimental import pallas as pl
from jax.experimental.pallas import tpu as pltpu

NPOINT = 10        # Sampler.__init__ sets self.npoint = 10
BATCH_BLOCK = 8    # sublane-pack 8 batches per grid step


def fps_kernel(x_ref, y_ref, z_ref, idx_ref):
    # x_ref/y_ref/z_ref : (8, N)       f32 VMEM — 8 batches of one coordinate plane
    # idx_ref           : (8, NPOINT)  i32 VMEM — sampled indices for those batches
    bb, n = x_ref.shape
    npoint = idx_ref.shape[1]

    lane_iota = lax.broadcasted_iota(jnp.int32, (bb, n), 1)       # point ids per row
    col_iota = lax.broadcasted_iota(jnp.int32, (bb, npoint), 1)   # output columns

    x = x_ref[...]
    y = y_ref[...]
    z = z_ref[...]

    # running min squared distance, init 1e10 (matches the CUDA op)
    dist = jnp.full((bb, n), 1e10, dtype=jnp.float32)

    # first sampled point is index 0 for every batch (column 0 of idx_acc stays 0)
    idx_acc = jnp.zeros((bb, npoint), dtype=jnp.int32)
    px = x[:, 0:1]
    py = y[:, 0:1]
    pz = z[:, 0:1]

    # fully unrolled sampling loop (npoint is a small static constant)
    for j in range(1, npoint):
        dx = x - px
        dy = y - py
        dz = z - pz
        d = dx * dx + dy * dy + dz * dz                 # (bb, n), pure VPU
        dist = jnp.minimum(dist, d)
        # per-batch max and first-occurrence argmax (two lane reductions)
        m = jnp.max(dist, axis=1, keepdims=True)        # (bb, 1)
        new_idx = jnp.min(
            jnp.where(dist == m, lane_iota, n), axis=1, keepdims=True
        ).astype(jnp.int32)                             # (bb, 1)
        # scatter the new index into its output column (tiny VPU select)
        idx_acc = jnp.where(col_iota == j, new_idx, idx_acc)
        if j < npoint - 1:
            # gather coords of the newly selected point per batch row
            sel = lane_iota == new_idx
            px = jnp.sum(jnp.where(sel, x, 0.0), axis=1, keepdims=True)
            py = jnp.sum(jnp.where(sel, y, 0.0), axis=1, keepdims=True)
            pz = jnp.sum(jnp.where(sel, z, 0.0), axis=1, keepdims=True)

    idx_ref[...] = idx_acc                              # single full-block store


def furthest_point_sample(xyz, npoint=NPOINT):
    """xyz: (B, N, 3) float32 -> (B, npoint) int32 indices."""
    B, N, _ = xyz.shape
    xyz = xyz.astype(jnp.float32)
    # feed three coordinate planes; avoids materializing a (B,N,3)->(B,3,N) transpose
    x, y, z = xyz[..., 0], xyz[..., 1], xyz[..., 2]

    bb = BATCH_BLOCK
    b_pad = ((B + bb - 1) // bb) * bb
    if b_pad != B:
        pad = ((0, b_pad - B), (0, 0))
        x = jnp.pad(x, pad)
        y = jnp.pad(y, pad)
        z = jnp.pad(z, pad)

    plane_spec = pl.BlockSpec((bb, N), lambda b: (b, 0))
    out = pl.pallas_call(
        fps_kernel,
        out_shape=jax.ShapeDtypeStruct((b_pad, npoint), jnp.int32),
        grid_spec=pltpu.PrefetchScalarGridSpec(
            num_scalar_prefetch=0,
            grid=(b_pad // bb,),
            in_specs=[plane_spec, plane_spec, plane_spec],
            out_specs=pl.BlockSpec((bb, npoint), lambda b: (b, 0)),
        ),
        compiler_params=pltpu.CompilerParams(dimension_semantics=("parallel",)),
    )(x, y, z)
    return out[:B]


class Sampler:
    """JAX/Pallas port of the PyTorch Sampler module (no learnable params)."""

    def __init__(self):
        self.npoint = NPOINT

    def __call__(self, xyz):
        return furthest_point_sample(xyz, self.npoint)


def fps_reference(xyz_np, npoint):
    """Pure-numpy reference of the CUDA furthest_point_sample semantics."""
    B, N, _ = xyz_np.shape
    idx = np.zeros((B, npoint), dtype=np.int32)
    for b in range(B):
        dist = np.full((N,), 1e10, dtype=np.float32)
        last = 0
        for j in range(1, npoint):
            d = np.sum((xyz_np[b] - xyz_np[b, last]) ** 2, axis=1).astype(np.float32)
            dist = np.minimum(dist, d)
            last = int(np.argmax(dist))
            idx[b, j] = last
    return idx


if __name__ == "__main__":
    key = jax.random.PRNGKey(0)
    B, N = 2, 256
    xyz = jax.random.normal(key, (B, N, 3), dtype=jnp.float32)

    sampler = Sampler()
    idx = jax.block_until_ready(sampler(xyz))

    assert idx.shape == (B, NPOINT), idx.shape
    assert idx.dtype == jnp.int32, idx.dtype

    ref = fps_reference(np.asarray(xyz), NPOINT)
    assert np.array_equal(np.asarray(idx), ref), (np.asarray(idx), ref)

    # second case exercising the batch-padding path (B not a multiple of 8)
    B2, N2 = 9, 128
    xyz2 = jax.random.normal(jax.random.PRNGKey(1), (B2, N2, 3), dtype=jnp.float32)
    idx2 = jax.block_until_ready(sampler(xyz2))
    ref2 = fps_reference(np.asarray(xyz2), NPOINT)
    assert np.array_equal(np.asarray(idx2), ref2), (np.asarray(idx2), ref2)

    print("KERNEL_OK")
</pallas_src>

<mosaic_0001>
module attributes {stable_mosaic.version = 11 : i64} {
  func.func @fps_kernel(%arg0: i32, %arg1: memref<8x256xf32, #tpu.memory_space<vmem>>, %arg2: memref<8x256xf32, #tpu.memory_space<vmem>>, %arg3: memref<8x256xf32, #tpu.memory_space<vmem>>, %arg4: memref<8x10xi32, #tpu.memory_space<vmem>>) attributes {dimension_semantics = [#tpu.dimension_semantics<parallel>], iteration_bounds = array<i64: 1>, scalar_prefetch = 0 : i64, scratch_operands = 0 : i64, tpu.core_type = #tpu.core_type<tc>, window_params = [{transform_indices = @transform_0, window_bounds = array<i64: 8, 256>}, {transform_indices = @transform_1, window_bounds = array<i64: 8, 256>}, {transform_indices = @transform_2, window_bounds = array<i64: 8, 256>}, {transform_indices = @transform_3, window_bounds = array<i64: 8, 10>}]} {
    %0 = tpu.iota {dimensions = array<i32: 1>} : vector<8x256xi32>
    %1 = tpu.iota {dimensions = array<i32: 1>} : vector<8x10xi32>
    %c0 = arith.constant 0 : index
    %c0_0 = arith.constant 0 : index
    %2 = vector.load %arg1[%c0, %c0_0] : memref<8x256xf32, #tpu.memory_space<vmem>>, vector<8x256xf32>
    %c0_1 = arith.constant 0 : index
    %c0_2 = arith.constant 0 : index
    %3 = vector.load %arg2[%c0_1, %c0_2] : memref<8x256xf32, #tpu.memory_space<vmem>>, vector<8x256xf32>
    %c0_3 = arith.constant 0 : index
    %c0_4 = arith.constant 0 : index
    %4 = vector.load %arg3[%c0_3, %c0_4] : memref<8x256xf32, #tpu.memory_space<vmem>>, vector<8x256xf32>
    %cst = arith.constant 1.000000e+10 : f32
    %5 = vector.broadcast %cst : f32 to vector<8x256xf32>
    %c0_i32 = arith.constant 0 : i32
    %6 = vector.broadcast %c0_i32 : i32 to vector<8x10xi32>
    %7 = vector.extract_strided_slice %2 {offsets = [0, 0], sizes = [8, 1], strides = [1, 1]} : vector<8x256xf32> to vector<8x1xf32>
    %8 = vector.extract_strided_slice %3 {offsets = [0, 0], sizes = [8, 1], strides = [1, 1]} : vector<8x256xf32> to vector<8x1xf32>
    %9 = vector.extract_strided_slice %4 {offsets = [0, 0], sizes = [8, 1], strides = [1, 1]} : vector<8x256xf32> to vector<8x1xf32>
    %10 = vector.broadcast %7 : vector<8x1xf32> to vector<8x256xf32>
    %11 = arith.subf %2, %10 : vector<8x256xf32>
    %12 = vector.broadcast %8 : vector<8x1xf32> to vector<8x256xf32>
    %13 = arith.subf %3, %12 : vector<8x256xf32>
    %14 = vector.broadcast %9 : vector<8x1xf32> to vector<8x256xf32>
    %15 = arith.subf %4, %14 : vector<8x256xf32>
    %16 = arith.mulf %11, %11 : vector<8x256xf32>
    %17 = arith.mulf %13, %13 : vector<8x256xf32>
    %18 = arith.addf %16, %17 : vector<8x256xf32>
    %19 = arith.mulf %15, %15 : vector<8x256xf32>
    %20 = arith.addf %18, %19 : vector<8x256xf32>
    %21 = arith.minimumf %5, %20 : vector<8x256xf32>
    %cst_5 = arith.constant dense<0xFF800000> : vector<8xf32>
    %22 = vector.multi_reduction <maximumf>, %21, %cst_5 [1] : vector<8x256xf32> to vector<8xf32>
    %23 = vector.shape_cast %22 : vector<8xf32> to vector<8x1xf32>
    %24 = vector.broadcast %23 : vector<8x1xf32> to vector<8x256xf32>
    %25 = arith.cmpf oeq, %21, %24 : vector<8x256xf32>
    %c256_i32 = arith.constant 256 : i32
    %26 = vector.broadcast %c256_i32 : i32 to vector<8x256xi32>
    %27 = arith.select %25, %0, %26 : vector<8x256xi1>, vector<8x256xi32>
    %cst_6 = arith.constant dense<2147483647> : vector<8xi32>
    %28 = vector.multi_reduction <minsi>, %27, %cst_6 [1] : vector<8x256xi32> to vector<8xi32>
    %29 = vector.shape_cast %28 : vector<8xi32> to vector<8x1xi32>
    %c1_i32 = arith.constant 1 : i32
    %30 = vector.broadcast %c1_i32 : i32 to vector<8x10xi32>
    %31 = arith.cmpi eq, %1, %30 : vector<8x10xi32>
    %32 = vector.shape_cast %29 : vector<8x1xi32> to vector<8x1xi32>
    %33 = vector.broadcast %32 : vector<8x1xi32> to vector<8x10xi32>
    %34 = arith.select %31, %33, %6 : vector<8x10xi1>, vector<8x10xi32>
    %35 = vector.broadcast %29 : vector<8x1xi32> to vector<8x256xi32>
    %36 = arith.cmpi eq, %0, %35 : vector<8x256xi32>
    %cst_7 = arith.constant 0.000000e+00 : f32
    %37 = vector.broadcast %cst_7 : f32 to vector<8x256xf32>
    %38 = arith.select %36, %2, %37 : vector<8x256xi1>, vector<8x256xf32>
    %cst_8 = arith.constant dense<0.000000e+00> : vector<8xf32>
    %39 = vector.multi_reduction <add>, %38, %cst_8 [1] : vector<8x256xf32> to vector<8xf32>
    %40 = vector.shape_cast %39 : vector<8xf32> to vector<8x1xf32>
    %cst_9 = arith.constant 0.000000e+00 : f32
    %41 = vector.broadcast %cst_9 : f32 to vector<8x256xf32>
    %42 = arith.select %36, %3, %41 : vector<8x256xi1>, vector<8x256xf32>
    %cst_10 = arith.constant dense<0.000000e+00> : vector<8xf32>
    %43 = vector.multi_reduction <add>, %42, %cst_10 [1] : vector<8x256xf32> to vector<8xf32>
    %44 = vector.shape_cast %43 : vector<8xf32> to vector<8x1xf32>
    %cst_11 = arith.constant 0.000000e+00 : f32
    %45 = vector.broadcast %cst_11 : f32 to vector<8x256xf32>
    %46 = arith.select %36, %4, %45 : vector<8x256xi1>, vector<8x256xf32>
    %cst_12 = arith.constant dense<0.000000e+00> : vector<8xf32>
    %47 = vector.multi_reduction <add>, %46, %cst_12 [1] : vector<8x256xf32> to vector<8xf32>
    %48 = vector.shape_cast %47 : vector<8xf32> to vector<8x1xf32>
    %49 = vector.broadcast %40 : vector<8x1xf32> to vector<8x256xf32>
    %50 = arith.subf %2, %49 : vector<8x256xf32>
    %51 = vector.broadcast %44 : vector<8x1xf32> to vector<8x256xf32>
    %52 = arith.subf %3, %51 : vector<8x256xf32>
    %53 = vector.broadcast %48 : vector<8x1xf32> to vector<8x256xf32>
    %54 = arith.subf %4, %53 : vector<8x256xf32>
    %55 = arith.mulf %50, %50 : vector<8x256xf32>
    %56 = arith.mulf %52, %52 : vector<8x256xf32>
    %57 = arith.addf %55, %56 : vector<8x256xf32>
    %58 = arith.mulf %54, %54 : vector<8x256xf32>
    %59 = arith.addf %57, %58 : vector<8x256xf32>
    %60 = arith.minimumf %21, %59 : vector<8x256xf32>
    %cst_13 = arith.constant dense<0xFF800000> : vector<8xf32>
    %61 = vector.multi_reduction <maximumf>, %60, %cst_13 [1] : vector<8x256xf32> to vector<8xf32>
    %62 = vector.shape_cast %61 : vector<8xf32> to vector<8x1xf32>
    %63 = vector.broadcast %62 : vector<8x1xf32> to vector<8x256xf32>
    %64 = arith.cmpf oeq, %60, %63 : vector<8x256xf32>
    %c256_i32_14 = arith.constant 256 : i32
    %65 = vector.broadcast %c256_i32_14 : i32 to vector<8x256xi32>
    %66 = arith.select %64, %0, %65 : vector<8x256xi1>, vector<8x256xi32>
    %cst_15 = arith.constant dense<2147483647> : vector<8xi32>
    %67 = vector.multi_reduction <minsi>, %66, %cst_15 [1] : vector<8x256xi32> to vector<8xi32>
    %68 = vector.shape_cast %67 : vector<8xi32> to vector<8x1xi32>
    %c2_i32 = arith.constant 2 : i32
    %69 = vector.broadcast %c2_i32 : i32 to vector<8x10xi32>
    %70 = arith.cmpi eq, %1, %69 : vector<8x10xi32>
    %71 = vector.shape_cast %68 : vector<8x1xi32> to vector<8x1xi32>
    %72 = vector.broadcast %71 : vector<8x1xi32> to vector<8x10xi32>
    %73 = arith.select %70, %72, %34 : vector<8x10xi1>, vector<8x10xi32>
    %74 = vector.broadcast %68 : vector<8x1xi32> to vector<8x256xi32>
    %75 = arith.cmpi eq, %0, %74 : vector<8x256xi32>
    %cst_16 = arith.constant 0.000000e+00 : f32
    %76 = vector.broadcast %cst_16 : f32 to vector<8x256xf32>
    %77 = arith.select %75, %2, %76 : vector<8x256xi1>, vector<8x256xf32>
    %cst_17 = arith.constant dense<0.000000e+00> : vector<8xf32>
    %78 = vector.multi_reduction <add>, %77, %cst_17 [1] : vector<8x256xf32> to vector<8xf32>
    %79 = vector.shape_cast %78 : vector<8xf32> to vector<8x1xf32>
    %cst_18 = arith.constant 0.000000e+00 : f32
    %80 = vector.broadcast %cst_18 : f32 to vector<8x256xf32>
    %81 = arith.select %75, %3, %80 : vector<8x256xi1>, vector<8x256xf32>
    %cst_19 = arith.constant dense<0.000000e+00> : vector<8xf32>
    %82 = vector.multi_reduction <add>, %81, %cst_19 [1] : vector<8x256xf32> to vector<8xf32>
    %83 = vector.shape_cast %82 : vector<8xf32> to vector<8x1xf32>
    %cst_20 = arith.constant 0.000000e+00 : f32
    %84 = vector.broadcast %cst_20 : f32 to vector<8x256xf32>
    %85 = arith.select %75, %4, %84 : vector<8x256xi1>, vector<8x256xf32>
    %cst_21 = arith.constant dense<0.000000e+00> : vector<8xf32>
    %86 = vector.multi_reduction <add>, %85, %cst_21 [1] : vector<8x256xf32> to vector<8xf32>
    %87 = vector.shape_cast %86 : vector<8xf32> to vector<8x1xf32>
    %88 = vector.broadcast %79 : vector<8x1xf32> to vector<8x256xf32>
    %89 = arith.subf %2, %88 : vector<8x256xf32>
    %90 = vector.broadcast %83 : vector<8x1xf32> to vector<8x256xf32>
    %91 = arith.subf %3, %90 : vector<8x256xf32>
    %92 = vector.broadcast %87 : vector<8x1xf32> to vector<8x256xf32>
    %93 = arith.subf %4, %92 : vector<8x256xf32>
    %94 = arith.mulf %89, %89 : vector<8x256xf32>
    %95 = arith.mulf %91, %91 : vector<8x256xf32>
    %96 = arith.addf %94, %95 : vector<8x256xf32>
    %97 = arith.mulf %93, %93 : vector<8x256xf32>
    %98 = arith.addf %96, %97 : vector<8x256xf32>
    %99 = arith.minimumf %60, %98 : vector<8x256xf32>
    %cst_22 = arith.constant dense<0xFF800000> : vector<8xf32>
    %100 = vector.multi_reduction <maximumf>, %99, %cst_22 [1] : vector<8x256xf32> to vector<8xf32>
    %101 = vector.shape_cast %100 : vector<8xf32> to vector<8x1xf32>
    %102 = vector.broadcast %101 : vector<8x1xf32> to vector<8x256xf32>
    %103 = arith.cmpf oeq, %99, %102 : vector<8x256xf32>
    %c256_i32_23 = arith.constant 256 : i32
    %104 = vector.broadcast %c256_i32_23 : i32 to vector<8x256xi32>
    %105 = arith.select %103, %0, %104 : vector<8x256xi1>, vector<8x256xi32>
    %cst_24 = arith.constant dense<2147483647> : vector<8xi32>
    %106 = vector.multi_reduction <minsi>, %105, %cst_24 [1] : vector<8x256xi32> to vector<8xi32>
    %107 = vector.shape_cast %106 : vector<8xi32> to vector<8x1xi32>
    %c3_i32 = arith.constant 3 : i32
    %108 = vector.broadcast %c3_i32 : i32 to vector<8x10xi32>
    %109 = arith.cmpi eq, %1, %108 : vector<8x10xi32>
    %110 = vector.shape_cast %107 : vector<8x1xi32> to vector<8x1xi32>
    %111 = vector.broadcast %110 : vector<8x1xi32> to vector<8x10xi32>
    %112 = arith.select %109, %111, %73 : vector<8x10xi1>, vector<8x10xi32>
    %113 = vector.broadcast %107 : vector<8x1xi32> to vector<8x256xi32>
    %114 = arith.cmpi eq, %0, %113 : vector<8x256xi32>
    %cst_25 = arith.constant 0.000000e+00 : f32
    %115 = vector.broadcast %cst_25 : f32 to vector<8x256xf32>
    %116 = arith.select %114, %2, %115 : vector<8x256xi1>, vector<8x256xf32>
    %cst_26 = arith.constant dense<0.000000e+00> : vector<8xf32>
    %117 = vector.multi_reduction <add>, %116, %cst_26 [1] : vector<8x256xf32> to vector<8xf32>
    %118 = vector.shape_cast %117 : vector<8xf32> to vector<8x1xf32>
    %cst_27 = arith.constant 0.000000e+00 : f32
    %119 = vector.broadcast %cst_27 : f32 to vector<8x256xf32>
    %120 = arith.select %114, %3, %119 : vector<8x256xi1>, vector<8x256xf32>
    %cst_28 = arith.constant dense<0.000000e+00> : vector<8xf32>
    %121 = vector.multi_reduction <add>, %120, %cst_28 [1] : vector<8x256xf32> to vector<8xf32>
    %122 = vector.shape_cast %121 : vector<8xf32> to vector<8x1xf32>
    %cst_29 = arith.constant 0.000000e+00 : f32
    %123 = vector.broadcast %cst_29 : f32 to vector<8x256xf32>
    %124 = arith.select %114, %4, %123 : vector<8x256xi1>, vector<8x256xf32>
    %cst_30 = arith.constant dense<0.000000e+00> : vector<8xf32>
    %125 = vector.multi_reduction <add>, %124, %cst_30 [1] : vector<8x256xf32> to vector<8xf32>
    %126 = vector.shape_cast %125 : vector<8xf32> to vector<8x1xf32>
    %127 = vector.broadcast %118 : vector<8x1xf32> to vector<8x256xf32>
    %128 = arith.subf %2, %127 : vector<8x256xf32>
    %129 = vector.broadcast %122 : vector<8x1xf32> to vector<8x256xf32>
    %130 = arith.subf %3, %129 : vector<8x256xf32>
    %131 = vector.broadcast %126 : vector<8x1xf32> to vector<8x256xf32>
    %132 = arith.subf %4, %131 : vector<8x256xf32>
    %133 = arith.mulf %128, %128 : vector<8x256xf32>
    %134 = arith.mulf %130, %130 : vector<8x256xf32>
    %135 = arith.addf %133, %134 : vector<8x256xf32>
    %136 = arith.mulf %132, %132 : vector<8x256xf32>
    %137 = arith.addf %135, %136 : vector<8x256xf32>
    %138 = arith.minimumf %99, %137 : vector<8x256xf32>
    %cst_31 = arith.constant dense<0xFF800000> : vector<8xf32>
    %139 = vector.multi_reduction <maximumf>, %138, %cst_31 [1] : vector<8x256xf32> to vector<8xf32>
    %140 = vector.shape_cast %139 : vector<8xf32> to vector<8x1xf32>
    %141 = vector.broadcast %140 : vector<8x1xf32> to vector<8x256xf32>
    %142 = arith.cmpf oeq, %138, %141 : vector<8x256xf32>
    %c256_i32_32 = arith.constant 256 : i32
    %143 = vector.broadcast %c256_i32_32 : i32 to vector<8x256xi32>
    %144 = arith.select %142, %0, %143 : vector<8x256xi1>, vector<8x256xi32>
    %cst_33 = arith.constant dense<2147483647> : vector<8xi32>
    %145 = vector.multi_reduction <minsi>, %144, %cst_33 [1] : vector<8x256xi32> to vector<8xi32>
    %146 = vector.shape_cast %145 : vector<8xi32> to vector<8x1xi32>
    %c4_i32 = arith.constant 4 : i32
    %147 = vector.broadcast %c4_i32 : i32 to vector<8x10xi32>
    %148 = arith.cmpi eq, %1, %147 : vector<8x10xi32>
    %149 = vector.shape_cast %146 : vector<8x1xi32> to vector<8x1xi32>
    %150 = vector.broadcast %149 : vector<8x1xi32> to vector<8x10xi32>
    %151 = arith.select %148, %150, %112 : vector<8x10xi1>, vector<8x10xi32>
    %152 = vector.broadcast %146 : vector<8x1xi32> to vector<8x256xi32>
    %153 = arith.cmpi eq, %0, %152 : vector<8x256xi32>
    %cst_34 = arith.constant 0.000000e+00 : f32
    %154 = vector.broadcast %cst_34 : f32 to vector<8x256xf32>
    %155 = arith.select %153, %2, %154 : vector<8x256xi1>, vector<8x256xf32>
    %cst_35 = arith.constant dense<0.000000e+00> : vector<8xf32>
    %156 = vector.multi_reduction <add>, %155, %cst_35 [1] : vector<8x256xf32> to vector<8xf32>
    %157 = vector.shape_cast %156 : vector<8xf32> to vector<8x1xf32>
    %cst_36 = arith.constant 0.000000e+00 : f32
    %158 = vector.broadcast %cst_36 : f32 to vector<8x256xf32>
    %159 = arith.select %153, %3, %158 : vector<8x256xi1>, vector<8x256xf32>
    %cst_37 = arith.constant dense<0.000000e+00> : vector<8xf32>
    %160 = vector.multi_reduction <add>, %159, %cst_37 [1] : vector<8x256xf32> to vector<8xf32>
    %161 = vector.shape_cast %160 : vector<8xf32> to vector<8x1xf32>
    %cst_38 = arith.constant 0.000000e+00 : f32
    %162 = vector.broadcast %cst_38 : f32 to vector<8x256xf32>
    %163 = arith.select %153, %4, %162 : vector<8x256xi1>, vector<8x256xf32>
    %cst_39 = arith.constant dense<0.000000e+00> : vector<8xf32>
    %164 = vector.multi_reduction <add>, %163, %cst_39 [1] : vector<8x256xf32> to vector<8xf32>
    %165 = vector.shape_cast %164 : vector<8xf32> to vector<8x1xf32>
    %166 = vector.broadcast %157 : vector<8x1xf32> to vector<8x256xf32>
    %167 = arith.subf %2, %166 : vector<8x256xf32>
    %168 = vector.broadcast %161 : vector<8x1xf32> to vector<8x256xf32>
    %169 = arith.subf %3, %168 : vector<8x256xf32>
    %170 = vector.broadcast %165 : vector<8x1xf32> to vector<8x256xf32>
    %171 = arith.subf %4, %170 : vector<8x256xf32>
    %172 = arith.mulf %167, %167 : vector<8x256xf32>
    %173 = arith.mulf %169, %169 : vector<8x256xf32>
    %174 = arith.addf %172, %173 : vector<8x256xf32>
    %175 = arith.mulf %171, %171 : vector<8x256xf32>
    %176 = arith.addf %174, %175 : vector<8x256xf32>
    %177 = arith.minimumf %138, %176 : vector<8x256xf32>
    %cst_40 = arith.constant dense<0xFF800000> : vector<8xf32>
    %178 = vector.multi_reduction <maximumf>, %177, %cst_40 [1] : vector<8x256xf32> to vector<8xf32>
    %179 = vector.shape_cast %178 : vector<8xf32> to vector<8x1xf32>
    %180 = vector.broadcast %179 : vector<8x1xf32> to vector<8x256xf32>
    %181 = arith.cmpf oeq, %177, %180 : vector<8x256xf32>
    %c256_i32_41 = arith.constant 256 : i32
    %182 = vector.broadcast %c256_i32_41 : i32 to vector<8x256xi32>
    %183 = arith.select %181, %0, %182 : vector<8x256xi1>, vector<8x256xi32>
    %cst_42 = arith.constant dense<2147483647> : vector<8xi32>
    %184 = vector.multi_reduction <minsi>, %183, %cst_42 [1] : vector<8x256xi32> to vector<8xi32>
    %185 = vector.shape_cast %184 : vector<8xi32> to vector<8x1xi32>
    %c5_i32 = arith.constant 5 : i32
    %186 = vector.broadcast %c5_i32 : i32 to vector<8x10xi32>
    %187 = arith.cmpi eq, %1, %186 : vector<8x10xi32>
    %188 = vector.shape_cast %185 : vector<8x1xi32> to vector<8x1xi32>
    %189 = vector.broadcast %188 : vector<8x1xi32> to vector<8x10xi32>
    %190 = arith.select %187, %189, %151 : vector<8x10xi1>, vector<8x10xi32>
    %191 = vector.broadcast %185 : vector<8x1xi32> to vector<8x256xi32>
    %192 = arith.cmpi eq, %0, %191 : vector<8x256xi32>
    %cst_43 = arith.constant 0.000000e+00 : f32
    %193 = vector.broadcast %cst_43 : f32 to vector<8x256xf32>
    %194 = arith.select %192, %2, %193 : vector<8x256xi1>, vector<8x256xf32>
    %cst_44 = arith.constant dense<0.000000e+00> : vector<8xf32>
    %195 = vector.multi_reduction <add>, %194, %cst_44 [1] : vector<8x256xf32> to vector<8xf32>
    %196 = vector.shape_cast %195 : vector<8xf32> to vector<8x1xf32>
    %cst_45 = arith.constant 0.000000e+00 : f32
    %197 = vector.broadcast %cst_45 : f32 to vector<8x256xf32>
    %198 = arith.select %192, %3, %197 : vector<8x256xi1>, vector<8x256xf32>
    %cst_46 = arith.constant dense<0.000000e+00> : vector<8xf32>
    %199 = vector.multi_reduction <add>, %198, %cst_46 [1] : vector<8x256xf32> to vector<8xf32>
    %200 = vector.shape_cast %199 : vector<8xf32> to vector<8x1xf32>
    %cst_47 = arith.constant 0.000000e+00 : f32
    %201 = vector.broadcast %cst_47 : f32 to vector<8x256xf32>
    %202 = arith.select %192, %4, %201 : vector<8x256xi1>, vector<8x256xf32>
    %cst_48 = arith.constant dense<0.000000e+00> : vector<8xf32>
    %203 = vector.multi_reduction <add>, %202, %cst_48 [1] : vector<8x256xf32> to vector<8xf32>
    %204 = vector.shape_cast %203 : vector<8xf32> to vector<8x1xf32>
    %205 = vector.broadcast %196 : vector<8x1xf32> to vector<8x256xf32>
    %206 = arith.subf %2, %205 : vector<8x256xf32>
    %207 = vector.broadcast %200 : vector<8x1xf32> to vector<8x256xf32>
    %208 = arith.subf %3, %207 : vector<8x256xf32>
    %209 = vector.broadcast %204 : vector<8x1xf32> to vector<8x256xf32>
    %210 = arith.subf %4, %209 : vector<8x256xf32>
    %211 = arith.mulf %206, %206 : vector<8x256xf32>
    %212 = arith.mulf %208, %208 : vector<8x256xf32>
    %213 = arith.addf %211, %212 : vector<8x256xf32>
    %214 = arith.mulf %210, %210 : vector<8x256xf32>
    %215 = arith.addf %213, %214 : vector<8x256xf32>
    %216 = arith.minimumf %177, %215 : vector<8x256xf32>
    %cst_49 = arith.constant dense<0xFF800000> : vector<8xf32>
    %217 = vector.multi_reduction <maximumf>, %216, %cst_49 [1] : vector<8x256xf32> to vector<8xf32>
    %218 = vector.shape_cast %217 : vector<8xf32> to vector<8x1xf32>
    %219 = vector.broadcast %218 : vector<8x1xf32> to vector<8x256xf32>
    %220 = arith.cmpf oeq, %216, %219 : vector<8x256xf32>
    %c256_i32_50 = arith.constant 256 : i32
    %221 = vector.broadcast %c256_i32_50 : i32 to vector<8x256xi32>
    %222 = arith.select %220, %0, %221 : vector<8x256xi1>, vector<8x256xi32>
    %cst_51 = arith.constant dense<2147483647> : vector<8xi32>
    %223 = vector.multi_reduction <minsi>, %222, %cst_51 [1] : vector<8x256xi32> to vector<8xi32>
    %224 = vector.shape_cast %223 : vector<8xi32> to vector<8x1xi32>
    %c6_i32 = arith.constant 6 : i32
    %225 = vector.broadcast %c6_i32 : i32 to vector<8x10xi32>
    %226 = arith.cmpi eq, %1, %225 : vector<8x10xi32>
    %227 = vector.shape_cast %224 : vector<8x1xi32> to vector<8x1xi32>
    %228 = vector.broadcast %227 : vector<8x1xi32> to vector<8x10xi32>
    %229 = arith.select %226, %228, %190 : vector<8x10xi1>, vector<8x10xi32>
    %230 = vector.broadcast %224 : vector<8x1xi32> to vector<8x256xi32>
    %231 = arith.cmpi eq, %0, %230 : vector<8x256xi32>
    %cst_52 = arith.constant 0.000000e+00 : f32
    %232 = vector.broadcast %cst_52 : f32 to vector<8x256xf32>
    %233 = arith.select %231, %2, %232 : vector<8x256xi1>, vector<8x256xf32>
    %cst_53 = arith.constant dense<0.000000e+00> : vector<8xf32>
    %234 = vector.multi_reduction <add>, %233, %cst_53 [1] : vector<8x256xf32> to vector<8xf32>
    %235 = vector.shape_cast %234 : vector<8xf32> to vector<8x1xf32>
    %cst_54 = arith.constant 0.000000e+00 : f32
    %236 = vector.broadcast %cst_54 : f32 to vector<8x256xf32>
    %237 = arith.select %231, %3, %236 : vector<8x256xi1>, vector<8x256xf32>
    %cst_55 = arith.constant dense<0.000000e+00> : vector<8xf32>
    %238 = vector.multi_reduction <add>, %237, %cst_55 [1] : vector<8x256xf32> to vector<8xf32>
    %239 = vector.shape_cast %238 : vector<8xf32> to vector<8x1xf32>
    %cst_56 = arith.constant 0.000000e+00 : f32
    %240 = vector.broadcast %cst_56 : f32 to vector<8x256xf32>
    %241 = arith.select %231, %4, %240 : vector<8x256xi1>, vector<8x256xf32>
    %cst_57 = arith.constant dense<0.000000e+00> : vector<8xf32>
    %242 = vector.multi_reduction <add>, %241, %cst_57 [1] : vector<8x256xf32> to vector<8xf32>
    %243 = vector.shape_cast %242 : vector<8xf32> to vector<8x1xf32>
    %244 = vector.broadcast %235 : vector<8x1xf32> to vector<8x256xf32>
    %245 = arith.subf %2, %244 : vector<8x256xf32>
    %246 = vector.broadcast %239 : vector<8x1xf32> to vector<8x256xf32>
    %247 = arith.subf %3, %246 : vector<8x256xf32>
    %248 = vector.broadcast %243 : vector<8x1xf32> to vector<8x256xf32>
    %249 = arith.subf %4, %248 : vector<8x256xf32>
    %250 = arith.mulf %245, %245 : vector<8x256xf32>
    %251 = arith.mulf %247, %247 : vector<8x256xf32>
    %252 = arith.addf %250, %251 : vector<8x256xf32>
    %253 = arith.mulf %249, %249 : vector<8x256xf32>
    %254 = arith.addf %252, %253 : vector<8x256xf32>
    %255 = arith.minimumf %216, %254 : vector<8x256xf32>
    %cst_58 = arith.constant dense<0xFF800000> : vector<8xf32>
    %256 = vector.multi_reduction <maximumf>, %255, %cst_58 [1] : vector<8x256xf32> to vector<8xf32>
    %257 = vector.shape_cast %256 : vector<8xf32> to vector<8x1xf32>
    %258 = vector.broadcast %257 : vector<8x1xf32> to vector<8x256xf32>
    %259 = arith.cmpf oeq, %255, %258 : vector<8x256xf32>
    %c256_i32_59 = arith.constant 256 : i32
    %260 = vector.broadcast %c256_i32_59 : i32 to vector<8x256xi32>
    %261 = arith.select %259, %0, %260 : vector<8x256xi1>, vector<8x256xi32>
    %cst_60 = arith.constant dense<2147483647> : vector<8xi32>
    %262 = vector.multi_reduction <minsi>, %261, %cst_60 [1] : vector<8x256xi32> to vector<8xi32>
    %263 = vector.shape_cast %262 : vector<8xi32> to vector<8x1xi32>
    %c7_i32 = arith.constant 7 : i32
    %264 = vector.broadcast %c7_i32 : i32 to vector<8x10xi32>
    %265 = arith.cmpi eq, %1, %264 : vector<8x10xi32>
    %266 = vector.shape_cast %263 : vector<8x1xi32> to vector<8x1xi32>
    %267 = vector.broadcast %266 : vector<8x1xi32> to vector<8x10xi32>
    %268 = arith.select %265, %267, %229 : vector<8x10xi1>, vector<8x10xi32>
    %269 = vector.broadcast %263 : vector<8x1xi32> to vector<8x256xi32>
    %270 = arith.cmpi eq, %0, %269 : vector<8x256xi32>
    %cst_61 = arith.constant 0.000000e+00 : f32
    %271 = vector.broadcast %cst_61 : f32 to vector<8x256xf32>
    %272 = arith.select %270, %2, %271 : vector<8x256xi1>, vector<8x256xf32>
    %cst_62 = arith.constant dense<0.000000e+00> : vector<8xf32>
    %273 = vector.multi_reduction <add>, %272, %cst_62 [1] : vector<8x256xf32> to vector<8xf32>
    %274 = vector.shape_cast %273 : vector<8xf32> to vector<8x1xf32>
    %cst_63 = arith.constant 0.000000e+00 : f32
    %275 = vector.broadcast %cst_63 : f32 to vector<8x256xf32>
    %276 = arith.select %270, %3, %275 : vector<8x256xi1>, vector<8x256xf32>
    %cst_64 = arith.constant dense<0.000000e+00> : vector<8xf32>
    %277 = vector.multi_reduction <add>, %276, %cst_64 [1] : vector<8x256xf32> to vector<8xf32>
    %278 = vector.shape_cast %277 : vector<8xf32> to vector<8x1xf32>
    %cst_65 = arith.constant 0.000000e+00 : f32
    %279 = vector.broadcast %cst_65 : f32 to vector<8x256xf32>
    %280 = arith.select %270, %4, %279 : vector<8x256xi1>, vector<8x256xf32>
    %cst_66 = arith.constant dense<0.000000e+00> : vector<8xf32>
    %281 = vector.multi_reduction <add>, %280, %cst_66 [1] : vector<8x256xf32> to vector<8xf32>
    %282 = vector.shape_cast %281 : vector<8xf32> to vector<8x1xf32>
    %283 = vector.broadcast %274 : vector<8x1xf32> to vector<8x256xf32>
    %284 = arith.subf %2, %283 : vector<8x256xf32>
    %285 = vector.broadcast %278 : vector<8x1xf32> to vector<8x256xf32>
    %286 = arith.subf %3, %285 : vector<8x256xf32>
    %287 = vector.broadcast %282 : vector<8x1xf32> to vector<8x256xf32>
    %288 = arith.subf %4, %287 : vector<8x256xf32>
    %289 = arith.mulf %284, %284 : vector<8x256xf32>
    %290 = arith.mulf %286, %286 : vector<8x256xf32>
    %291 = arith.addf %289, %290 : vector<8x256xf32>
    %292 = arith.mulf %288, %288 : vector<8x256xf32>
    %293 = arith.addf %291, %292 : vector<8x256xf32>
    %294 = arith.minimumf %255, %293 : vector<8x256xf32>
    %cst_67 = arith.constant dense<0xFF800000> : vector<8xf32>
    %295 = vector.multi_reduction <maximumf>, %294, %cst_67 [1] : vector<8x256xf32> to vector<8xf32>
    %296 = vector.shape_cast %295 : vector<8xf32> to vector<8x1xf32>
    %297 = vector.broadcast %296 : vector<8x1xf32> to vector<8x256xf32>
    %298 = arith.cmpf oeq, %294, %297 : vector<8x256xf32>
    %c256_i32_68 = arith.constant 256 : i32
    %299 = vector.broadcast %c256_i32_68 : i32 to vector<8x256xi32>
    %300 = arith.select %298, %0, %299 : vector<8x256xi1>, vector<8x256xi32>
    %cst_69 = arith.constant dense<2147483647> : vector<8xi32>
    %301 = vector.multi_reduction <minsi>, %300, %cst_69 [1] : vector<8x256xi32> to vector<8xi32>
    %302 = vector.shape_cast %301 : vector<8xi32> to vector<8x1xi32>
    %c8_i32 = arith.constant 8 : i32
    %303 = vector.broadcast %c8_i32 : i32 to vector<8x10xi32>
    %304 = arith.cmpi eq, %1, %303 : vector<8x10xi32>
    %305 = vector.shape_cast %302 : vector<8x1xi32> to vector<8x1xi32>
    %306 = vector.broadcast %305 : vector<8x1xi32> to vector<8x10xi32>
    %307 = arith.select %304, %306, %268 : vector<8x10xi1>, vector<8x10xi32>
    %308 = vector.broadcast %302 : vector<8x1xi32> to vector<8x256xi32>
    %309 = arith.cmpi eq, %0, %308 : vector<8x256xi32>
    %cst_70 = arith.constant 0.000000e+00 : f32
    %310 = vector.broadcast %cst_70 : f32 to vector<8x256xf32>
    %311 = arith.select %309, %2, %310 : vector<8x256xi1>, vector<8x256xf32>
    %cst_71 = arith.constant dense<0.000000e+00> : vector<8xf32>
    %312 = vector.multi_reduction <add>, %311, %cst_71 [1] : vector<8x256xf32> to vector<8xf32>
    %313 = vector.shape_cast %312 : vector<8xf32> to vector<8x1xf32>
    %cst_72 = arith.constant 0.000000e+00 : f32
    %314 = vector.broadcast %cst_72 : f32 to vector<8x256xf32>
    %315 = arith.select %309, %3, %314 : vector<8x256xi1>, vector<8x256xf32>
    %cst_73 = arith.constant dense<0.000000e+00> : vector<8xf32>
    %316 = vector.multi_reduction <add>, %315, %cst_73 [1] : vector<8x256xf32> to vector<8xf32>
    %317 = vector.shape_cast %316 : vector<8xf32> to vector<8x1xf32>
    %cst_74 = arith.constant 0.000000e+00 : f32
    %318 = vector.broadcast %cst_74 : f32 to vector<8x256xf32>
    %319 = arith.select %309, %4, %318 : vector<8x256xi1>, vector<8x256xf32>
    %cst_75 = arith.constant dense<0.000000e+00> : vector<8xf32>
    %320 = vector.multi_reduction <add>, %319, %cst_75 [1] : vector<8x256xf32> to vector<8xf32>
    %321 = vector.shape_cast %320 : vector<8xf32> to vector<8x1xf32>
    %322 = vector.broadcast %313 : vector<8x1xf32> to vector<8x256xf32>
    %323 = arith.subf %2, %322 : vector<8x256xf32>
    %324 = vector.broadcast %317 : vector<8x1xf32> to vector<8x256xf32>
    %325 = arith.subf %3, %324 : vector<8x256xf32>
    %326 = vector.broadcast %321 : vector<8x1xf32> to vector<8x256xf32>
    %327 = arith.subf %4, %326 : vector<8x256xf32>
    %328 = arith.mulf %323, %323 : vector<8x256xf32>
    %329 = arith.mulf %325, %325 : vector<8x256xf32>
    %330 = arith.addf %328, %329 : vector<8x256xf32>
    %331 = arith.mulf %327, %327 : vector<8x256xf32>
    %332 = arith.addf %330, %331 : vector<8x256xf32>
    %333 = arith.minimumf %294, %332 : vector<8x256xf32>
    %cst_76 = arith.constant dense<0xFF800000> : vector<8xf32>
    %334 = vector.multi_reduction <maximumf>, %333, %cst_76 [1] : vector<8x256xf32> to vector<8xf32>
    %335 = vector.shape_cast %334 : vector<8xf32> to vector<8x1xf32>
    %336 = vector.broadcast %335 : vector<8x1xf32> to vector<8x256xf32>
    %337 = arith.cmpf oeq, %333, %336 : vector<8x256xf32>
    %c256_i32_77 = arith.constant 256 : i32
    %338 = vector.broadcast %c256_i32_77 : i32 to vector<8x256xi32>
    %339 = arith.select %337, %0, %338 : vector<8x256xi1>, vector<8x256xi32>
    %cst_78 = arith.constant dense<2147483647> : vector<8xi32>
    %340 = vector.multi_reduction <minsi>, %339, %cst_78 [1] : vector<8x256xi32> to vector<8xi32>
    %341 = vector.shape_cast %340 : vector<8xi32> to vector<8x1xi32>
    %c9_i32 = arith.constant 9 : i32
    %342 = vector.broadcast %c9_i32 : i32 to vector<8x10xi32>
    %343 = arith.cmpi eq, %1, %342 : vector<8x10xi32>
    %344 = vector.shape_cast %341 : vector<8x1xi32> to vector<8x1xi32>
    %345 = vector.broadcast %344 : vector<8x1xi32> to vector<8x10xi32>
    %346 = arith.select %343, %345, %307 : vector<8x10xi1>, vector<8x10xi32>
    %c0_79 = arith.constant 0 : index
    %c0_80 = arith.constant 0 : index
    %347 = vector.load %arg4[%c0_79, %c0_80] : memref<8x10xi32, #tpu.memory_space<vmem>>, vector<8x10xi32>
    tpu.vector_store %arg4[%c0_79, %c0_80], %346 {strides = array<i32>} : memref<8x10xi32, #tpu.memory_space<vmem>>, vector<8x10xi32>,
    return
  }
  func.func @transform_0(%arg0: i32) -> (i32, i32) {
    %c0_i32 = arith.constant 0 : i32
    %c0_i32_0 = arith.constant 0 : i32
    return %arg0, %c0_i32 : i32, i32
  }
  func.func @transform_1(%arg0: i32) -> (i32, i32) {
    %c0_i32 = arith.constant 0 : i32
    %c0_i32_0 = arith.constant 0 : i32
    return %arg0, %c0_i32 : i32, i32
  }
  func.func @transform_2(%arg0: i32) -> (i32, i32) {
    %c0_i32 = arith.constant 0 : i32
    %c0_i32_0 = arith.constant 0 : i32
    return %arg0, %c0_i32 : i32, i32
  }
  func.func @transform_3(%arg0: i32) -> (i32, i32) {
    %c0_i32 = arith.constant 0 : i32
    %c0_i32_0 = arith.constant 0 : i32
    return %arg0, %c0_i32 : i32, i32
  }
}

</mosaic_0001>

<bundles_post_ra>
// kernel: tpu_custom_call.1
= control target key start
LH: loop header
LB: loop body
LE: loop exit
PB: predicated region body
PF: predicated region fallthrough
CT: control target
= control target key end

     0   :  { %8 = vsyncpa [#allocation3], 0  ;;  %s960_s0 = inlined_call_operand.hbm [shape: f32[8,256], index: 0, kind: input, shape index: {}]   ;;  %s961_s1 = inlined_call_operand.hbm [shape: f32[8,256], index: 1, kind: input, shape index: {}]   ;;  %s962_s2 = inlined_call_operand.hbm [shape: f32[8,256], index: 2, kind: input, shape index: {}]   ;;  %s963_s3 = inlined_call_operand.hbm [shape: s32[8,10], index: 3, kind: output, shape index: {}]  }
   0x1   :  { %9 = vsyncpa [#allocation6], 0 }
   0x2   :  { %10 = vsyncpa [#allocation4], 0  ;;  %s716_s12 = smov [#allocation5]   ;;  %s717_s14 = smov [#allocation2]  }
   0x3   :  { %s27_s13 = sshll.u32 %s716_s12, 4  ;;  %s17_s15 = sshll.u32 %s717_s14, 4  ;;  %s28_s13 = int_to_ptr.vmem [resolvable:$true] %s27_s13  ;;  %s18_s15 = int_to_ptr.vmem [resolvable:$true] %s17_s15 }
   0x4   :  { %s622_s18 = scalar_lea.hbm %s961_s1, 256 }
   0x5   :  { %p623_p0 = scmp.ne.s32.totalorder %s961_s1, %s622_s18  ;;  %p626_p1 = scmp.lt.u32.totalorder %s622_s18, %s961_s1 }
   0x7   :  { %p628_p2 = pnand %p626_p1, %p623_p0 }
   0x9   :  { %631 = shalt.err (!%p628_p2)
}
   0xa   :  { %s632_s23 = scalar_lea.vmem %s28_s13, 256  ;;  %p637_p4 = scmp.lt.s32.totalorder %s28_s13, %s28_s13 }
   0xb   :  { %p633_p3 = scmp.ne.s32.totalorder %s28_s13, %s632_s23  ;;  %p638_p5 = scmp.lt.s32.totalorder %s632_s23, %s632_s23 }
   0xd   :  { %p639_p6 = por %p638_p5, %p637_p4 }
   0xf   :  { %p640_p7 = pnand %p639_p6, %p633_p3 }
  0x11   :  { %643 = shalt.err (!%p640_p7)
}
  0x12   :  { %30 = dma.hbm_to_vmem [thread:$0]  %s961_s1, 256, %s28_s13, [#allocation6]  }
  0x13   :  { %s644_s28 = scalar_lea.hbm %s960_s0, 256 }
  0x14   :  { %p645_p8 = scmp.ne.s32.totalorder %s960_s0, %s644_s28  ;;  %p648_p9 = scmp.lt.u32.totalorder %s644_s28, %s960_s0 }
  0x16   :  { %p650_p10 = pnand %p648_p9, %p645_p8 }
  0x18   :  { %653 = shalt.err (!%p650_p10)
}
  0x19   :  { %s654_s6 = scalar_lea.vmem %s18_s15, 256  ;;  %p659_p12 = scmp.lt.s32.totalorder %s18_s15, %s18_s15 }
  0x1a   :  { %p655_p11 = scmp.ne.s32.totalorder %s18_s15, %s654_s6  ;;  %p660_p13 = scmp.lt.s32.totalorder %s654_s6, %s654_s6 }
  0x1c   :  { %p661_p0 = por %p660_p13, %p659_p12 }
  0x1e   :  { %p662_p1 = pnand %p661_p0, %p655_p11 }
  0x20   :  { %665 = shalt.err (!%p662_p1)
}
  0x21   :  { %20 = dma.hbm_to_vmem [thread:$0]  %s960_s0, 256, %s18_s15, [#allocation3]  }
  0x22   :  { %s718_s8 = smov [#allocation7]   ;;  %s666_s12 = scalar_lea.hbm %s962_s2, 256 }
  0x23   :  { %s37_s9 = sshll.u32 %s718_s8, 4  ;;  %p667_p2 = scmp.ne.s32.totalorder %s962_s2, %s666_s12  ;;  %s38_s9 = int_to_ptr.vmem [resolvable:$true] %s37_s9 }
  0x24   :  { %p670_p3 = scmp.lt.u32.totalorder %s666_s12, %s962_s2 }
  0x26   :  { %p672_p4 = pnand %p670_p3, %p667_p2 }
  0x28   :  { %675 = shalt.err (!%p672_p4)
}
  0x29   :  { %s676_s18 = scalar_lea.vmem %s38_s9, 256  ;;  %p681_p6 = scmp.lt.s32.totalorder %s38_s9, %s38_s9 }
  0x2a   :  { %p677_p5 = scmp.ne.s32.totalorder %s38_s9, %s676_s18  ;;  %p682_p7 = scmp.lt.s32.totalorder %s676_s18, %s676_s18 }
  0x2c   :  { %p683_p8 = por %p682_p7, %p681_p6 }
  0x2e   :  { %p684_p9 = pnand %p683_p8, %p677_p5 }
  0x30   :  { %687 = shalt.err (!%p684_p9)
}
  0x31   :  { %40 = dma.hbm_to_vmem [thread:$0]  %s962_s2, 256, %s38_s9, [#allocation6]  }
  0x32   :  { %710 = dma.done.wait [#allocation3], 256  }
  0x33   :  { %711 = vsyncadd [#allocation3], 4294967040 }
  0x34   :  { %712 = dma.done.wait [#allocation6], 512  }
  0x35   :  { %713 = vsyncadd [#allocation6], 4294966784  ;;  %v719_v0 = vmov 0   ;;  %v777_v1 = vld [vmem:[#allocation2] sm:$0xff]  ;;  %v783_v3 = vld [vmem:[#allocation5] sm:$0xff]  ;;  %v50_v29 = vlaneseq  ;;  %s720_s2 = smov [#allocation8]  }
  0x36   :  { %620 = vset.pattern.permute.xlu0 %v719_v0  ;;  %621 = vset.pattern.permute.xlu1 %v719_v0  ;;  %v779_v2 = vld [vmem:[#allocation7] sm:$0xff]  ;;  %v786_v4 = vld [vmem:[#allocation2 + $0x8] sm:$0xff]  ;;  %v792_v10 = vld [vmem:[#allocation5 + $0x8] sm:$0xff]  ;;  %s605_s19 = sshll.u32 %s720_s2, 4  ;;  %s606_s19 = int_to_ptr.vmem [resolvable:$true] %s605_s19 }
  0x37   :  { %61 = vperm.xlu0 %620, %v777_v1   ;;  %75 = vperm.xlu1 %621, %v779_v2   ;;  %v788_v6 = vld [vmem:[#allocation7 + $0x8] sm:$0xff]  ;;  %v798_v30 = vand.u32 127, %v50_v29  ;;  %s688_s20 = scalar_lea.vmem %s606_s19, 128  ;;  %p693_p11 = scmp.lt.s32.totalorder %s606_s19, %s606_s19 }
  0x38   :  { %p689_p10 = scmp.ne.s32.totalorder %s606_s19, %s688_s20  ;;  %p694_p12 = scmp.lt.s32.totalorder %s688_s20, %s688_s20 }
  0x39   :  { %v801_v31 = vadd.s32 128, %v798_v30  ;;  %vm115_vm10 = vcmp.eq.s32.totalorder %v798_v30, 1  ;;  %vm175_vm11 = vcmp.eq.s32.totalorder %v798_v30, 2 }
  0x3a   :  { %p695_p13 = por %p694_p12, %p693_p11 }
  0x3b   :  { %68 = vperm.xlu0 %620, %v783_v3  }
  0x3c   :  { %p696_p0 = pnand %p695_p13, %p689_p10 }
  0xb6   :  { %v62_v5 = vpop.permute.xlu0 %61  ;;  %v76_v7 = vpop.permute.xlu1 %75 }
  0xb7   :  { %v64_v8 = vsub.f32 %v777_v1, %v62_v5  ;;  %v65_v9 = vsub.f32 %v786_v4, %v62_v5  ;;  %v78_v11 = vsub.f32 %v779_v2, %v76_v7  ;;  %v79_v12 = vsub.f32 %v788_v6, %v76_v7 }
  0xb9   :  { %v80_v16 = vmul.f32 %v64_v8, %v64_v8  ;;  %v81_v17 = vmul.f32 %v65_v9, %v65_v9  ;;  %v86_v20 = vmul.f32 %v78_v11, %v78_v11  ;;  %v87_v21 = vmul.f32 %v79_v12, %v79_v12 }
  0xba   :  { %v69_v13 = vpop.permute.xlu0 %68 }
  0xbb   :  { %v71_v14 = vsub.f32 %v783_v3, %v69_v13  ;;  %v72_v15 = vsub.f32 %v792_v10, %v69_v13 }
  0xbd   :  { %v82_v18 = vmul.f32 %v71_v14, %v71_v14  ;;  %v83_v19 = vmul.f32 %v72_v15, %v72_v15 }
  0xbf   :  { %v84_v22 = vadd.f32 %v82_v18, %v80_v16  ;;  %v85_v23 = vadd.f32 %v83_v19, %v81_v17 }
  0xc1   :  { %v88_v24 = vadd.f32 %v86_v20, %v84_v22  ;;  %v89_v25 = vadd.f32 %v87_v21, %v85_v23 }
  0xc3   :  { %v90_v26 = vmin.f32 %v88_v24, 1e+10  ;;  %v91_v27 = vmin.f32 %v89_v25, 1e+10 }
  0xc5   :  { %v92_v28 = vmax.f32 %v90_v26, %v91_v27 }
  0xc7   :  { %93 = vmax.xlane.f32.xlu1 %v92_v28 }
 0x154   :  { %v94_v32 = vpop.xlane.xlu1 %93 }
 0x155   :  { %vm95_vm0 = vcmp.eq.f32.partialorder %v90_v26, %v94_v32  ;;  %vm96_vm1 = vcmp.eq.f32.partialorder %v91_v27, %v94_v32 }
 0x156   :  { %v97_v33 = vsel %vm95_vm0, %v798_v30, 256  ;;  %v98_v34 = vsel %vm96_vm1, %v801_v31, 256 }
 0x157   :  { %vm99_vm2 = vcmp.lt.s32.totalorder %v97_v33, %v98_v34 }
 0x158   :  { %v100_v35 = vsel %vm99_vm2, %v97_v33, %v98_v34  ;;  %vm235_vm2 = vcmp.eq.s32.totalorder %v798_v30, 3 }
 0x159   :  { %v102_v36 = vshra.s32 %v100_v35, 16  ;;  %v101_v38 = vand.u32 65535, %v100_v35 }
 0x15b   :  { %v104_v37 = vcvt.s32.f32 %v102_v36  ;;  %v103_v40 = vcvt.s32.f32 %v101_v38 }
 0x15d   :  { %105 = vmin.xlane.f32.xlu0 %v104_v37 }
 0x1ea   :  { %v106_v39 = vpop.xlane.xlu0 %105 }
 0x1eb   :  { %vm107_vm3 = vcmp.eq.f32.partialorder %v104_v37, %v106_v39  ;;  %v112_v42 = vcvt.f32.s32 %v106_v39 }
 0x1ec   :  { %v108_v41 = vsel %vm107_vm3, %v103_v40, inf }
 0x1ed   :  { %109 = vmin.xlane.f32.xlu0 %v108_v41  ;;  %v113_v44 = vshll.u32 %v112_v42, 16 }
 0x27a   :  { %v110_v43 = vpop.xlane.xlu0 %109 }
 0x27b   :  { %v111_v45 = vcvt.f32.s32 %v110_v43 }
 0x27d   :  { %v114_v46 = vadd.s32 %v113_v44, %v111_v45 }
 0x27f   :  { %vm117_vm4 = vcmp.eq.s32.totalorder %v798_v30, %v114_v46  ;;  %vm118_vm5 = vcmp.eq.s32.totalorder %v801_v31, %v114_v46  ;;  %v116_v37 = vsel %vm115_vm10, %v114_v46, 0 }
 0x280   :  { %v124_v47 = vsel %vm117_vm4, %v783_v3, 0.0  ;;  %v125_v48 = vsel %vm118_vm5, %v792_v10, 0.0  ;;  %v119_v49 = vsel %vm117_vm4, %v777_v1, 0.0  ;;  %v120_v50 = vsel %vm118_vm5, %v786_v4, 0.0 }
 0x281   :  { %v126_v51 = vadd.f32 %v125_v48, %v124_v47  ;;  %v121_v52 = vadd.f32 %v120_v50, %v119_v49  ;;  %v129_v53 = vsel %vm117_vm4, %v779_v2, 0.0  ;;  %v130_v54 = vsel %vm118_vm5, %v788_v6, 0.0 }
 0x282   :  { %v131_v55 = vadd.f32 %v130_v54, %v129_v53 }
 0x283   :  { %127 = vadd.xlane.f32.xlu0 %v126_v51  ;;  %122 = vadd.xlane.f32.xlu1 %v121_v52 }
 0x287   :  { %132 = vadd.xlane.f32.xlu1 %v131_v55 }
 0x310   :  { %v128_v56 = vpop.xlane.xlu0 %127  ;;  %v123_v57 = vpop.xlane.xlu1 %122 }
 0x311   :  { %v136_v58 = vsub.f32 %v783_v3, %v128_v56  ;;  %v137_v59 = vsub.f32 %v792_v10, %v128_v56  ;;  %v134_v60 = vsub.f32 %v777_v1, %v123_v57  ;;  %v135_v61 = vsub.f32 %v786_v4, %v123_v57 }
 0x313   :  { %v142_v62 = vmul.f32 %v136_v58, %v136_v58  ;;  %v143_v63 = vmul.f32 %v137_v59, %v137_v59  ;;  %v140_v0 = vmul.f32 %v134_v60, %v134_v60  ;;  %v141_v5 = vmul.f32 %v135_v61, %v135_v61 }
 0x314   :  { %v133_v7 = vpop.xlane.xlu1 %132 }
 0x315   :  { %v138_v8 = vsub.f32 %v779_v2, %v133_v7  ;;  %v139_v9 = vsub.f32 %v788_v6, %v133_v7  ;;  %v144_v11 = vadd.f32 %v142_v62, %v140_v0  ;;  %v145_v12 = vadd.f32 %v143_v63, %v141_v5 }
 0x317   :  { %v146_v13 = vmul.f32 %v138_v8, %v138_v8  ;;  %v147_v14 = vmul.f32 %v139_v9, %v139_v9 }
 0x319   :  { %v148_v15 = vadd.f32 %v146_v13, %v144_v11  ;;  %v149_v16 = vadd.f32 %v147_v14, %v145_v12 }
 0x31b   :  { %v150_v17 = vmin.f32 %v90_v26, %v148_v15  ;;  %v151_v18 = vmin.f32 %v91_v27, %v149_v16 }
 0x31d   :  { %v152_v19 = vmax.f32 %v150_v17, %v151_v18 }
 0x31f   :  { %153 = vmax.xlane.f32.xlu0 %v152_v19 }
 0x3ac   :  { %v154_v20 = vpop.xlane.xlu0 %153 }
 0x3ad   :  { %vm155_vm6 = vcmp.eq.f32.partialorder %v150_v17, %v154_v20  ;;  %vm156_vm7 = vcmp.eq.f32.partialorder %v151_v18, %v154_v20 }
 0x3ae   :  { %v157_v21 = vsel %vm155_vm6, %v798_v30, 256  ;;  %v158_v22 = vsel %vm156_vm7, %v801_v31, 256 }
 0x3af   :  { %vm159_vm8 = vcmp.lt.s32.totalorder %v157_v21, %v158_v22 }
 0x3b0   :  { %v160_v23 = vsel %vm159_vm8, %v157_v21, %v158_v22 }
 0x3b1   :  { %v162_v24 = vshra.s32 %v160_v23, 16  ;;  %v161_v28 = vand.u32 65535, %v160_v23 }
 0x3b3   :  { %v164_v25 = vcvt.s32.f32 %v162_v24  ;;  %v163_v32 = vcvt.s32.f32 %v161_v28 }
 0x3b5   :  { %165 = vmin.xlane.f32.xlu1 %v164_v25 }
 0x442   :  { %v166_v29 = vpop.xlane.xlu1 %165 }
 0x443   :  { %vm167_vm9 = vcmp.eq.f32.partialorder %v164_v25, %v166_v29  ;;  %v172_v27 = vcvt.f32.s32 %v166_v29 }
 0x444   :  { %v168_v26 = vsel %vm167_vm9, %v163_v32, inf  ;;  %vm295_vm9 = vcmp.eq.s32.totalorder %v798_v30, 4 }
 0x445   :  { %169 = vmin.xlane.f32.xlu0 %v168_v26  ;;  %v173_v34 = vshll.u32 %v172_v27, 16 }
 0x4d2   :  { %v170_v33 = vpop.xlane.xlu0 %169 }
 0x4d3   :  { %v171_v35 = vcvt.f32.s32 %v170_v33 }
 0x4d5   :  { %v174_v36 = vadd.s32 %v173_v34, %v171_v35 }
 0x4d7   :  { %v176_v38 = vsel %vm175_vm11, %v174_v36, %v116_v37  ;;  %vm177_vm12 = vcmp.eq.s32.totalorder %v798_v30, %v174_v36  ;;  %vm178_vm13 = vcmp.eq.s32.totalorder %v801_v31, %v174_v36 }
 0x4d8   :  { %v184_v39 = vsel %vm177_vm12, %v783_v3, 0.0  ;;  %v185_v40 = vsel %vm178_vm13, %v792_v10, 0.0  ;;  %v179_v41 = vsel %vm177_vm12, %v777_v1, 0.0  ;;  %v180_v42 = vsel %vm178_vm13, %v786_v4, 0.0 }
 0x4d9   :  { %v186_v43 = vadd.f32 %v185_v40, %v184_v39  ;;  %v181_v44 = vadd.f32 %v180_v42, %v179_v41  ;;  %v189_v45 = vsel %vm177_vm12, %v779_v2, 0.0  ;;  %v190_v47 = vsel %vm178_vm13, %v788_v6, 0.0 }
 0x4da   :  { %v191_v46 = vadd.f32 %v190_v47, %v189_v45 }
 0x4db   :  { %187 = vadd.xlane.f32.xlu0 %v186_v43  ;;  %182 = vadd.xlane.f32.xlu1 %v181_v44 }
 0x4df   :  { %192 = vadd.xlane.f32.xlu1 %v191_v46 }
 0x568   :  { %v188_v48 = vpop.xlane.xlu0 %187  ;;  %v183_v49 = vpop.xlane.xlu1 %182 }
 0x569   :  { %v196_v50 = vsub.f32 %v783_v3, %v188_v48  ;;  %v197_v51 = vsub.f32 %v792_v10, %v188_v48  ;;  %v194_v52 = vsub.f32 %v777_v1, %v183_v49  ;;  %v195_v53 = vsub.f32 %v786_v4, %v183_v49 }
 0x56b   :  { %v202_v54 = vmul.f32 %v196_v50, %v196_v50  ;;  %v203_v55 = vmul.f32 %v197_v51, %v197_v51  ;;  %v200_v56 = vmul.f32 %v194_v52, %v194_v52  ;;  %v201_v57 = vmul.f32 %v195_v53, %v195_v53 }
 0x56c   :  { %v193_v58 = vpop.xlane.xlu1 %192 }
 0x56d   :  { %v198_v59 = vsub.f32 %v779_v2, %v193_v58  ;;  %v199_v60 = vsub.f32 %v788_v6, %v193_v58  ;;  %v204_v61 = vadd.f32 %v202_v54, %v200_v56  ;;  %v205_v62 = vadd.f32 %v203_v55, %v201_v57 }
 0x56f   :  { %v206_v63 = vmul.f32 %v198_v59, %v198_v59  ;;  %v207_v0 = vmul.f32 %v199_v60, %v199_v60 }
 0x571   :  { %v208_v5 = vadd.f32 %v206_v63, %v204_v61  ;;  %v209_v7 = vadd.f32 %v207_v0, %v205_v62 }
 0x573   :  { %v210_v8 = vmin.f32 %v150_v17, %v208_v5  ;;  %v211_v9 = vmin.f32 %v151_v18, %v209_v7 }
 0x575   :  { %v212_v11 = vmax.f32 %v210_v8, %v211_v9 }
 0x577   :  { %213 = vmax.xlane.f32.xlu0 %v212_v11 }
 0x604   :  { %v214_v12 = vpop.xlane.xlu0 %213 }
 0x605   :  { %vm215_vm14 = vcmp.eq.f32.partialorder %v210_v8, %v214_v12  ;;  %vm216_vm15 = vcmp.eq.f32.partialorder %v211_v9, %v214_v12 }
 0x606   :  { %v217_v13 = vsel %vm215_vm14, %v798_v30, 256  ;;  %v218_v14 = vsel %vm216_vm15, %v801_v31, 256 }
 0x607   :  { %vm219_vm0 = vcmp.lt.s32.totalorder %v217_v13, %v218_v14 }
 0x608   :  { %v220_v15 = vsel %vm219_vm0, %v217_v13, %v218_v14  ;;  %vm355_vm0 = vcmp.eq.s32.totalorder %v798_v30, 5 }
 0x609   :  { %v222_v16 = vshra.s32 %v220_v15, 16  ;;  %v221_v20 = vand.u32 65535, %v220_v15 }
 0x60b   :  { %v224_v19 = vcvt.s32.f32 %v222_v16  ;;  %v223_v22 = vcvt.s32.f32 %v221_v20 }
 0x60d   :  { %225 = vmin.xlane.f32.xlu1 %v224_v19 }
 0x69a   :  { %v226_v21 = vpop.xlane.xlu1 %225 }
 0x69b   :  { %vm227_vm1 = vcmp.eq.f32.partialorder %v224_v19, %v226_v21  ;;  %v232_v18 = vcvt.f32.s32 %v226_v21 }
 0x69c   :  { %v228_v17 = vsel %vm227_vm1, %v223_v22, inf }
 0x69d   :  { %229 = vmin.xlane.f32.xlu0 %v228_v17  ;;  %v233_v24 = vshll.u32 %v232_v18, 16 }
 0x72a   :  { %v230_v23 = vpop.xlane.xlu0 %229 }
 0x72b   :  { %v231_v25 = vcvt.f32.s32 %v230_v23 }
 0x72d   :  { %v234_v28 = vadd.s32 %v233_v24, %v231_v25 }
 0x72f   :  { %v236_v29 = vsel %vm235_vm2, %v234_v28, %v176_v38  ;;  %vm237_vm3 = vcmp.eq.s32.totalorder %v798_v30, %v234_v28  ;;  %vm238_vm4 = vcmp.eq.s32.totalorder %v801_v31, %v234_v28 }
 0x730   :  { %v244_v32 = vsel %vm237_vm3, %v783_v3, 0.0  ;;  %v245_v26 = vsel %vm238_vm4, %v792_v10, 0.0  ;;  %v239_v27 = vsel %vm237_vm3, %v777_v1, 0.0  ;;  %v240_v33 = vsel %vm238_vm4, %v786_v4, 0.0 }
 0x731   :  { %v246_v34 = vadd.f32 %v245_v26, %v244_v32  ;;  %v241_v35 = vadd.f32 %v240_v33, %v239_v27  ;;  %v249_v36 = vsel %vm237_vm3, %v779_v2, 0.0  ;;  %v250_v37 = vsel %vm238_vm4, %v788_v6, 0.0 }
 0x732   :  { %v251_v38 = vadd.f32 %v250_v37, %v249_v36 }
 0x733   :  { %247 = vadd.xlane.f32.xlu0 %v246_v34  ;;  %242 = vadd.xlane.f32.xlu1 %v241_v35 }
 0x737   :  { %252 = vadd.xlane.f32.xlu1 %v251_v38 }
 0x7c0   :  { %v248_v39 = vpop.xlane.xlu0 %247  ;;  %v243_v40 = vpop.xlane.xlu1 %242 }
 0x7c1   :  { %v256_v41 = vsub.f32 %v783_v3, %v248_v39  ;;  %v257_v42 = vsub.f32 %v792_v10, %v248_v39  ;;  %v254_v43 = vsub.f32 %v777_v1, %v243_v40  ;;  %v255_v44 = vsub.f32 %v786_v4, %v243_v40 }
 0x7c3   :  { %v262_v45 = vmul.f32 %v256_v41, %v256_v41  ;;  %v263_v47 = vmul.f32 %v257_v42, %v257_v42  ;;  %v260_v46 = vmul.f32 %v254_v43, %v254_v43  ;;  %v261_v48 = vmul.f32 %v255_v44, %v255_v44 }
 0x7c4   :  { %v253_v49 = vpop.xlane.xlu1 %252 }
 0x7c5   :  { %v258_v50 = vsub.f32 %v779_v2, %v253_v49  ;;  %v259_v51 = vsub.f32 %v788_v6, %v253_v49  ;;  %v264_v52 = vadd.f32 %v262_v45, %v260_v46  ;;  %v265_v53 = vadd.f32 %v263_v47, %v261_v48 }
 0x7c7   :  { %v266_v54 = vmul.f32 %v258_v50, %v258_v50  ;;  %v267_v55 = vmul.f32 %v259_v51, %v259_v51 }
 0x7c9   :  { %v268_v56 = vadd.f32 %v266_v54, %v264_v52  ;;  %v269_v57 = vadd.f32 %v267_v55, %v265_v53 }
 0x7cb   :  { %v270_v58 = vmin.f32 %v210_v8, %v268_v56  ;;  %v271_v59 = vmin.f32 %v211_v9, %v269_v57 }
 0x7cd   :  { %v272_v60 = vmax.f32 %v270_v58, %v271_v59 }
 0x7cf   :  { %273 = vmax.xlane.f32.xlu0 %v272_v60 }
 0x85c   :  { %v274_v61 = vpop.xlane.xlu0 %273 }
 0x85d   :  { %vm275_vm5 = vcmp.eq.f32.partialorder %v270_v58, %v274_v61  ;;  %vm276_vm6 = vcmp.eq.f32.partialorder %v271_v59, %v274_v61 }
 0x85e   :  { %v277_v62 = vsel %vm275_vm5, %v798_v30, 256  ;;  %v278_v63 = vsel %vm276_vm6, %v801_v31, 256 }
 0x85f   :  { %vm279_vm7 = vcmp.lt.s32.totalorder %v277_v62, %v278_v63 }
 0x860   :  { %v280_v0 = vsel %vm279_vm7, %v277_v62, %v278_v63  ;;  %vm415_vm7 = vcmp.eq.s32.totalorder %v798_v30, 6 }
 0x861   :  { %v282_v5 = vshra.s32 %v280_v0, 16  ;;  %v281_v11 = vand.u32 65535, %v280_v0 }
 0x863   :  { %v284_v7 = vcvt.s32.f32 %v282_v5  ;;  %v283_v13 = vcvt.s32.f32 %v281_v11 }
 0x865   :  { %285 = vmin.xlane.f32.xlu1 %v284_v7 }
 0x8f2   :  { %v286_v12 = vpop.xlane.xlu1 %285 }
 0x8f3   :  { %vm287_vm8 = vcmp.eq.f32.partialorder %v284_v7, %v286_v12  ;;  %v292_v9 = vcvt.f32.s32 %v286_v12 }
 0x8f4   :  { %v288_v8 = vsel %vm287_vm8, %v283_v13, inf }
 0x8f5   :  { %289 = vmin.xlane.f32.xlu0 %v288_v8  ;;  %v293_v15 = vshll.u32 %v292_v9, 16 }
 0x982   :  { %v290_v14 = vpop.xlane.xlu0 %289 }
 0x983   :  { %v291_v16 = vcvt.f32.s32 %v290_v14 }
 0x985   :  { %v294_v19 = vadd.s32 %v293_v15, %v291_v16 }
 0x987   :  { %v296_v20 = vsel %vm295_vm9, %v294_v19, %v236_v29  ;;  %vm297_vm10 = vcmp.eq.s32.totalorder %v798_v30, %v294_v19  ;;  %vm298_vm11 = vcmp.eq.s32.totalorder %v801_v31, %v294_v19 }
 0x988   :  { %v304_v21 = vsel %vm297_vm10, %v783_v3, 0.0  ;;  %v305_v22 = vsel %vm298_vm11, %v792_v10, 0.0  ;;  %v299_v17 = vsel %vm297_vm10, %v777_v1, 0.0  ;;  %v300_v18 = vsel %vm298_vm11, %v786_v4, 0.0 }
 0x989   :  { %v306_v23 = vadd.f32 %v305_v22, %v304_v21  ;;  %v301_v24 = vadd.f32 %v300_v18, %v299_v17  ;;  %v309_v25 = vsel %vm297_vm10, %v779_v2, 0.0  ;;  %v310_v28 = vsel %vm298_vm11, %v788_v6, 0.0 }
 0x98a   :  { %v311_v29 = vadd.f32 %v310_v28, %v309_v25 }
 0x98b   :  { %307 = vadd.xlane.f32.xlu0 %v306_v23  ;;  %302 = vadd.xlane.f32.xlu1 %v301_v24 }
 0x98f   :  { %312 = vadd.xlane.f32.xlu1 %v311_v29 }
 0xa18   :  { %v308_v32 = vpop.xlane.xlu0 %307  ;;  %v303_v26 = vpop.xlane.xlu1 %302 }
 0xa19   :  { %v316_v27 = vsub.f32 %v783_v3, %v308_v32  ;;  %v317_v33 = vsub.f32 %v792_v10, %v308_v32  ;;  %v314_v34 = vsub.f32 %v777_v1, %v303_v26  ;;  %v315_v35 = vsub.f32 %v786_v4, %v303_v26 }
 0xa1b   :  { %v322_v36 = vmul.f32 %v316_v27, %v316_v27  ;;  %v323_v37 = vmul.f32 %v317_v33, %v317_v33  ;;  %v320_v38 = vmul.f32 %v314_v34, %v314_v34  ;;  %v321_v39 = vmul.f32 %v315_v35, %v315_v35 }
 0xa1c   :  { %v313_v40 = vpop.xlane.xlu1 %312 }
 0xa1d   :  { %v318_v41 = vsub.f32 %v779_v2, %v313_v40  ;;  %v319_v42 = vsub.f32 %v788_v6, %v313_v40  ;;  %v324_v43 = vadd.f32 %v322_v36, %v320_v38  ;;  %v325_v44 = vadd.f32 %v323_v37, %v321_v39 }
 0xa1f   :  { %v326_v45 = vmul.f32 %v318_v41, %v318_v41  ;;  %v327_v47 = vmul.f32 %v319_v42, %v319_v42 }
 0xa21   :  { %v328_v46 = vadd.f32 %v326_v45, %v324_v43  ;;  %v329_v48 = vadd.f32 %v327_v47, %v325_v44 }
 0xa23   :  { %v330_v49 = vmin.f32 %v270_v58, %v328_v46  ;;  %v331_v50 = vmin.f32 %v271_v59, %v329_v48 }
 0xa25   :  { %v332_v51 = vmax.f32 %v330_v49, %v331_v50 }
 0xa27   :  { %333 = vmax.xlane.f32.xlu0 %v332_v51 }
 0xab4   :  { %v334_v52 = vpop.xlane.xlu0 %333 }
 0xab5   :  { %vm335_vm12 = vcmp.eq.f32.partialorder %v330_v49, %v334_v52  ;;  %vm336_vm13 = vcmp.eq.f32.partialorder %v331_v50, %v334_v52 }
 0xab6   :  { %v337_v53 = vsel %vm335_vm12, %v798_v30, 256  ;;  %v338_v54 = vsel %vm336_vm13, %v801_v31, 256 }
 0xab7   :  { %vm339_vm14 = vcmp.lt.s32.totalorder %v337_v53, %v338_v54 }
 0xab8   :  { %v340_v55 = vsel %vm339_vm14, %v337_v53, %v338_v54  ;;  %vm475_vm14 = vcmp.eq.s32.totalorder %v798_v30, 7 }
 0xab9   :  { %v342_v56 = vshra.s32 %v340_v55, 16  ;;  %v341_v60 = vand.u32 65535, %v340_v55 }
 0xabb   :  { %v344_v57 = vcvt.s32.f32 %v342_v56  ;;  %v343_v62 = vcvt.s32.f32 %v341_v60 }
 0xabd   :  { %345 = vmin.xlane.f32.xlu1 %v344_v57 }
 0xb4a   :  { %v346_v61 = vpop.xlane.xlu1 %345 }
 0xb4b   :  { %vm347_vm15 = vcmp.eq.f32.partialorder %v344_v57, %v346_v61  ;;  %v352_v59 = vcvt.f32.s32 %v346_v61 }
 0xb4c   :  { %v348_v58 = vsel %vm347_vm15, %v343_v62, inf }
 0xb4d   :  { %349 = vmin.xlane.f32.xlu0 %v348_v58  ;;  %v353_v0 = vshll.u32 %v352_v59, 16 }
 0xbda   :  { %v350_v63 = vpop.xlane.xlu0 %349 }
 0xbdb   :  { %v351_v5 = vcvt.f32.s32 %v350_v63 }
 0xbdd   :  { %v354_v7 = vadd.s32 %v353_v0, %v351_v5 }
 0xbdf   :  { %v356_v11 = vsel %vm355_vm0, %v354_v7, %v296_v20  ;;  %vm357_vm1 = vcmp.eq.s32.totalorder %v798_v30, %v354_v7  ;;  %vm358_vm2 = vcmp.eq.s32.totalorder %v801_v31, %v354_v7 }
 0xbe0   :  { %v364_v12 = vsel %vm357_vm1, %v783_v3, 0.0  ;;  %v365_v13 = vsel %vm358_vm2, %v792_v10, 0.0  ;;  %v359_v8 = vsel %vm357_vm1, %v777_v1, 0.0  ;;  %v360_v9 = vsel %vm358_vm2, %v786_v4, 0.0 }
 0xbe1   :  { %v366_v14 = vadd.f32 %v365_v13, %v364_v12  ;;  %v361_v15 = vadd.f32 %v360_v9, %v359_v8  ;;  %v369_v16 = vsel %vm357_vm1, %v779_v2, 0.0  ;;  %v370_v19 = vsel %vm358_vm2, %v788_v6, 0.0 }
 0xbe2   :  { %v371_v20 = vadd.f32 %v370_v19, %v369_v16 }
 0xbe3   :  { %367 = vadd.xlane.f32.xlu0 %v366_v14  ;;  %362 = vadd.xlane.f32.xlu1 %v361_v15 }
 0xbe7   :  { %372 = vadd.xlane.f32.xlu1 %v371_v20 }
 0xc70   :  { %v368_v21 = vpop.xlane.xlu0 %367  ;;  %v363_v22 = vpop.xlane.xlu1 %362 }
 0xc71   :  { %v376_v17 = vsub.f32 %v783_v3, %v368_v21  ;;  %v377_v18 = vsub.f32 %v792_v10, %v368_v21  ;;  %v374_v23 = vsub.f32 %v777_v1, %v363_v22  ;;  %v375_v24 = vsub.f32 %v786_v4, %v363_v22 }
 0xc73   :  { %v382_v25 = vmul.f32 %v376_v17, %v376_v17  ;;  %v383_v28 = vmul.f32 %v377_v18, %v377_v18  ;;  %v380_v29 = vmul.f32 %v374_v23, %v374_v23  ;;  %v381_v32 = vmul.f32 %v375_v24, %v375_v24 }
 0xc74   :  { %v373_v26 = vpop.xlane.xlu1 %372 }
 0xc75   :  { %v378_v27 = vsub.f32 %v779_v2, %v373_v26  ;;  %v379_v33 = vsub.f32 %v788_v6, %v373_v26  ;;  %v384_v34 = vadd.f32 %v382_v25, %v380_v29  ;;  %v385_v35 = vadd.f32 %v383_v28, %v381_v32 }
 0xc77   :  { %v386_v36 = vmul.f32 %v378_v27, %v378_v27  ;;  %v387_v37 = vmul.f32 %v379_v33, %v379_v33 }
 0xc79   :  { %v388_v38 = vadd.f32 %v386_v36, %v384_v34  ;;  %v389_v39 = vadd.f32 %v387_v37, %v385_v35 }
 0xc7b   :  { %v390_v40 = vmin.f32 %v330_v49, %v388_v38  ;;  %v391_v41 = vmin.f32 %v331_v50, %v389_v39 }
 0xc7d   :  { %v392_v42 = vmax.f32 %v390_v40, %v391_v41 }
 0xc7f   :  { %393 = vmax.xlane.f32.xlu0 %v392_v42 }
 0xd0c   :  { %v394_v43 = vpop.xlane.xlu0 %393 }
 0xd0d   :  { %vm395_vm3 = vcmp.eq.f32.partialorder %v390_v40, %v394_v43  ;;  %vm396_vm4 = vcmp.eq.f32.partialorder %v391_v41, %v394_v43 }
 0xd0e   :  { %v397_v44 = vsel %vm395_vm3, %v798_v30, 256  ;;  %v398_v45 = vsel %vm396_vm4, %v801_v31, 256 }
 0xd0f   :  { %vm399_vm5 = vcmp.lt.s32.totalorder %v397_v44, %v398_v45 }
 0xd10   :  { %v400_v47 = vsel %vm399_vm5, %v397_v44, %v398_v45  ;;  %vm535_vm5 = vcmp.eq.s32.totalorder %v798_v30, 8 }
 0xd11   :  { %v402_v46 = vshra.s32 %v400_v47, 16  ;;  %v401_v51 = vand.u32 65535, %v400_v47 }
 0xd13   :  { %v404_v48 = vcvt.s32.f32 %v402_v46  ;;  %v403_v53 = vcvt.s32.f32 %v401_v51 }
 0xd15   :  { %405 = vmin.xlane.f32.xlu1 %v404_v48 }
 0xda2   :  { %v406_v52 = vpop.xlane.xlu1 %405 }
 0xda3   :  { %vm407_vm6 = vcmp.eq.f32.partialorder %v404_v48, %v406_v52  ;;  %v412_v50 = vcvt.f32.s32 %v406_v52 }
 0xda4   :  { %v408_v49 = vsel %vm407_vm6, %v403_v53, inf }
 0xda5   :  { %409 = vmin.xlane.f32.xlu0 %v408_v49  ;;  %v413_v55 = vshll.u32 %v412_v50, 16 }
 0xe32   :  { %v410_v54 = vpop.xlane.xlu0 %409 }
 0xe33   :  { %v411_v56 = vcvt.f32.s32 %v410_v54 }
 0xe35   :  { %v414_v57 = vadd.s32 %v413_v55, %v411_v56 }
 0xe37   :  { %v416_v60 = vsel %vm415_vm7, %v414_v57, %v356_v11  ;;  %vm417_vm8 = vcmp.eq.s32.totalorder %v798_v30, %v414_v57  ;;  %vm418_vm9 = vcmp.eq.s32.totalorder %v801_v31, %v414_v57 }
 0xe38   :  { %v424_v61 = vsel %vm417_vm8, %v783_v3, 0.0  ;;  %v425_v62 = vsel %vm418_vm9, %v792_v10, 0.0  ;;  %v419_v58 = vsel %vm417_vm8, %v777_v1, 0.0  ;;  %v420_v59 = vsel %vm418_vm9, %v786_v4, 0.0 }
 0xe39   :  { %v426_v63 = vadd.f32 %v425_v62, %v424_v61  ;;  %v421_v0 = vadd.f32 %v420_v59, %v419_v58  ;;  %v429_v5 = vsel %vm417_vm8, %v779_v2, 0.0  ;;  %v430_v7 = vsel %vm418_vm9, %v788_v6, 0.0 }
 0xe3a   :  { %v431_v11 = vadd.f32 %v430_v7, %v429_v5 }
 0xe3b   :  { %427 = vadd.xlane.f32.xlu0 %v426_v63  ;;  %422 = vadd.xlane.f32.xlu1 %v421_v0 }
 0xe3f   :  { %432 = vadd.xlane.f32.xlu1 %v431_v11 }
 0xec8   :  { %v428_v12 = vpop.xlane.xlu0 %427  ;;  %v423_v13 = vpop.xlane.xlu1 %422 }
 0xec9   :  { %v436_v8 = vsub.f32 %v783_v3, %v428_v12  ;;  %v437_v9 = vsub.f32 %v792_v10, %v428_v12  ;;  %v434_v14 = vsub.f32 %v777_v1, %v423_v13  ;;  %v435_v15 = vsub.f32 %v786_v4, %v423_v13 }
 0xecb   :  { %v442_v16 = vmul.f32 %v436_v8, %v436_v8  ;;  %v443_v19 = vmul.f32 %v437_v9, %v437_v9  ;;  %v440_v20 = vmul.f32 %v434_v14, %v434_v14  ;;  %v441_v21 = vmul.f32 %v435_v15, %v435_v15 }
 0xecc   :  { %v433_v22 = vpop.xlane.xlu1 %432 }
 0xecd   :  { %v438_v17 = vsub.f32 %v779_v2, %v433_v22  ;;  %v439_v18 = vsub.f32 %v788_v6, %v433_v22  ;;  %v444_v23 = vadd.f32 %v442_v16, %v440_v20  ;;  %v445_v24 = vadd.f32 %v443_v19, %v441_v21 }
 0xecf   :  { %v446_v25 = vmul.f32 %v438_v17, %v438_v17  ;;  %v447_v28 = vmul.f32 %v439_v18, %v439_v18 }
 0xed1   :  { %v448_v29 = vadd.f32 %v446_v25, %v444_v23  ;;  %v449_v32 = vadd.f32 %v447_v28, %v445_v24 }
 0xed3   :  { %v450_v26 = vmin.f32 %v390_v40, %v448_v29  ;;  %v451_v27 = vmin.f32 %v391_v41, %v449_v32 }
 0xed5   :  { %v452_v33 = vmax.f32 %v450_v26, %v451_v27 }
 0xed7   :  { %453 = vmax.xlane.f32.xlu0 %v452_v33 }
 0xf64   :  { %v454_v34 = vpop.xlane.xlu0 %453 }
 0xf65   :  { %vm455_vm10 = vcmp.eq.f32.partialorder %v450_v26, %v454_v34  ;;  %vm456_vm11 = vcmp.eq.f32.partialorder %v451_v27, %v454_v34 }
 0xf66   :  { %v457_v35 = vsel %vm455_vm10, %v798_v30, 256  ;;  %v458_v36 = vsel %vm456_vm11, %v801_v31, 256 }
 0xf67   :  { %vm459_vm12 = vcmp.lt.s32.totalorder %v457_v35, %v458_v36 }
 0xf68   :  { %v460_v37 = vsel %vm459_vm12, %v457_v35, %v458_v36  ;;  %vm595_vm12 = vcmp.eq.s32.totalorder %v798_v30, 9 }
 0xf69   :  { %v462_v38 = vshra.s32 %v460_v37, 16  ;;  %v461_v42 = vand.u32 65535, %v460_v37 }
 0xf6b   :  { %v464_v39 = vcvt.s32.f32 %v462_v38  ;;  %v463_v44 = vcvt.s32.f32 %v461_v42 }
 0xf6d   :  { %465 = vmin.xlane.f32.xlu1 %v464_v39 }
 0xffa   :  { %v466_v43 = vpop.xlane.xlu1 %465 }
 0xffb   :  { %vm467_vm13 = vcmp.eq.f32.partialorder %v464_v39, %v466_v43  ;;  %v472_v41 = vcvt.f32.s32 %v466_v43 }
 0xffc   :  { %v468_v40 = vsel %vm467_vm13, %v463_v44, inf  ;;  %vm597_vm13 = vcmask 80896  }
 0xffd   :  { %469 = vmin.xlane.f32.xlu0 %v468_v40  ;;  %v473_v47 = vshll.u32 %v472_v41, 16 }
0x108a   :  { %v470_v45 = vpop.xlane.xlu0 %469 }
0x108b   :  { %v471_v46 = vcvt.f32.s32 %v470_v45 }
0x108d   :  { %v474_v48 = vadd.s32 %v473_v47, %v471_v46 }
0x108f   :  { %v908_v51 = vsel %vm475_vm14, %v474_v48, %v416_v60  ;;  %vm477_vm15 = vcmp.eq.s32.totalorder %v798_v30, %v474_v48  ;;  %vm478_vm0 = vcmp.eq.s32.totalorder %v801_v31, %v474_v48 }
0x1090   :  { %v484_v52 = vsel %vm477_vm15, %v783_v3, 0.0  ;;  %v485_v53 = vsel %vm478_vm0, %v792_v10, 0.0  ;;  %v479_v49 = vsel %vm477_vm15, %v777_v1, 0.0  ;;  %v480_v50 = vsel %vm478_vm0, %v786_v4, 0.0 }
0x1091   :  { %v486_v54 = vadd.f32 %v485_v53, %v484_v52  ;;  %v481_v55 = vadd.f32 %v480_v50, %v479_v49  ;;  %v489_v56 = vsel %vm477_vm15, %v779_v2, 0.0  ;;  %v490_v57 = vsel %vm478_vm0, %v788_v6, 0.0 }
0x1092   :  { %v491_v60 = vadd.f32 %v490_v57, %v489_v56 }
0x1093   :  { %487 = vadd.xlane.f32.xlu0 %v486_v54  ;;  %482 = vadd.xlane.f32.xlu1 %v481_v55 }
0x1097   :  { %492 = vadd.xlane.f32.xlu1 %v491_v60 }
0x1120   :  { %v488_v61 = vpop.xlane.xlu0 %487  ;;  %v483_v62 = vpop.xlane.xlu1 %482 }
0x1121   :  { %v496_v58 = vsub.f32 %v783_v3, %v488_v61  ;;  %v497_v59 = vsub.f32 %v792_v10, %v488_v61  ;;  %v494_v63 = vsub.f32 %v777_v1, %v483_v62  ;;  %v495_v0 = vsub.f32 %v786_v4, %v483_v62 }
0x1123   :  { %v502_v5 = vmul.f32 %v496_v58, %v496_v58  ;;  %v503_v7 = vmul.f32 %v497_v59, %v497_v59  ;;  %v500_v11 = vmul.f32 %v494_v63, %v494_v63  ;;  %v501_v12 = vmul.f32 %v495_v0, %v495_v0 }
0x1124   :  { %v493_v13 = vpop.xlane.xlu1 %492 }
0x1125   :  { %v498_v8 = vsub.f32 %v779_v2, %v493_v13  ;;  %v499_v9 = vsub.f32 %v788_v6, %v493_v13  ;;  %v504_v14 = vadd.f32 %v502_v5, %v500_v11  ;;  %v505_v15 = vadd.f32 %v503_v7, %v501_v12 }
0x1127   :  { %v506_v16 = vmul.f32 %v498_v8, %v498_v8  ;;  %v507_v19 = vmul.f32 %v499_v9, %v499_v9 }
0x1129   :  { %v508_v20 = vadd.f32 %v506_v16, %v504_v14  ;;  %v509_v21 = vadd.f32 %v507_v19, %v505_v15 }
0x112b   :  { %v510_v22 = vmin.f32 %v450_v26, %v508_v20  ;;  %v511_v17 = vmin.f32 %v451_v27, %v509_v21 }
0x112d   :  { %v512_v18 = vmax.f32 %v510_v22, %v511_v17 }
0x112f   :  { %513 = vmax.xlane.f32.xlu0 %v512_v18 }
0x11bc   :  { %v514_v23 = vpop.xlane.xlu0 %513 }
0x11bd   :  { %vm515_vm1 = vcmp.eq.f32.partialorder %v510_v22, %v514_v23  ;;  %vm516_vm2 = vcmp.eq.f32.partialorder %v511_v17, %v514_v23 }
0x11be   :  { %v517_v24 = vsel %vm515_vm1, %v798_v30, 256  ;;  %v518_v25 = vsel %vm516_vm2, %v801_v31, 256 }
0x11bf   :  { %vm519_vm3 = vcmp.lt.s32.totalorder %v517_v24, %v518_v25 }
0x11c0   :  { %v520_v28 = vsel %vm519_vm3, %v517_v24, %v518_v25 }
0x11c1   :  { %v522_v29 = vshra.s32 %v520_v28, 16  ;;  %v521_v33 = vand.u32 65535, %v520_v28 }
0x11c3   :  { %v524_v32 = vcvt.s32.f32 %v522_v29  ;;  %v523_v35 = vcvt.s32.f32 %v521_v33 }
0x11c5   :  { %525 = vmin.xlane.f32.xlu1 %v524_v32 }
0x1252   :  { %v526_v34 = vpop.xlane.xlu1 %525 }
0x1253   :  { %vm527_vm4 = vcmp.eq.f32.partialorder %v524_v32, %v526_v34  ;;  %v532_v27 = vcvt.f32.s32 %v526_v34 }
0x1254   :  { %v528_v26 = vsel %vm527_vm4, %v523_v35, inf }
0x1255   :  { %529 = vmin.xlane.f32.xlu0 %v528_v26  ;;  %v533_v37 = vshll.u32 %v532_v27, 16 }
0x12e2   :  { %v530_v36 = vpop.xlane.xlu0 %529 }
0x12e3   :  { %v531_v38 = vcvt.f32.s32 %v530_v36 }
0x12e5   :  { %v534_v39 = vadd.s32 %v533_v37, %v531_v38 }
0x12e7   :  { %vm537_vm6 = vcmp.eq.s32.totalorder %v798_v30, %v534_v39  ;;  %vm538_vm7 = vcmp.eq.s32.totalorder %v801_v31, %v534_v39  ;;  %v930_v42 = vsel %vm535_vm5, %v534_v39, %v908_v51 }
0x12e8   :  { %v544_v43 = vsel %vm537_vm6, %v783_v3, 0.0  ;;  %v545_v44 = vsel %vm538_vm7, %v792_v10, 0.0  ;;  %v539_v40 = vsel %vm537_vm6, %v777_v1, 0.0  ;;  %v540_v41 = vsel %vm538_vm7, %v786_v4, 0.0 }
0x12e9   :  { %v546_v45 = vadd.f32 %v545_v44, %v544_v43  ;;  %v541_v47 = vadd.f32 %v540_v41, %v539_v40  ;;  %v549_v46 = vsel %vm537_vm6, %v779_v2, 0.0  ;;  %v550_v48 = vsel %vm538_vm7, %v788_v6, 0.0 }
0x12ea   :  { %v551_v52 = vadd.f32 %v550_v48, %v549_v46 }
0x12eb   :  { %547 = vadd.xlane.f32.xlu0 %v546_v45  ;;  %542 = vadd.xlane.f32.xlu1 %v541_v47 }
0x12ef   :  { %552 = vadd.xlane.f32.xlu1 %v551_v52 }
0x1378   :  { %v548_v51 = vpop.xlane.xlu0 %547  ;;  %v543_v53 = vpop.xlane.xlu1 %542 }
0x1379   :  { %v556_v49 = vsub.f32 %v783_v3, %v548_v51  ;;  %v557_v50 = vsub.f32 %v792_v10, %v548_v51  ;;  %v554_v54 = vsub.f32 %v777_v1, %v543_v53  ;;  %v555_v55 = vsub.f32 %v786_v4, %v543_v53 }
0x137b   :  { %v562_v56 = vmul.f32 %v556_v49, %v556_v49  ;;  %v563_v57 = vmul.f32 %v557_v50, %v557_v50  ;;  %v560_v60 = vmul.f32 %v554_v54, %v554_v54  ;;  %v561_v61 = vmul.f32 %v555_v55, %v555_v55 }
0x137c   :  { %v553_v62 = vpop.xlane.xlu1 %552 }
0x137d   :  { %v558_v58 = vsub.f32 %v779_v2, %v553_v62  ;;  %v559_v59 = vsub.f32 %v788_v6, %v553_v62  ;;  %v564_v63 = vadd.f32 %v562_v56, %v560_v60  ;;  %v565_v0 = vadd.f32 %v563_v57, %v561_v61 }
0x137f   :  { %v566_v5 = vmul.f32 %v558_v58, %v558_v58  ;;  %v567_v7 = vmul.f32 %v559_v59, %v559_v59 }
0x1381   :  { %v568_v3 = vadd.f32 %v566_v5, %v564_v63  ;;  %v569_v11 = vadd.f32 %v567_v7, %v565_v0 }
0x1383   :  { %v570_v10 = vmin.f32 %v510_v22, %v568_v3  ;;  %v571_v12 = vmin.f32 %v511_v17, %v569_v11 }
0x1385   :  { %v572_v1 = vmax.f32 %v570_v10, %v571_v12 }
0x1387   :  { %573 = vmax.xlane.f32.xlu0 %v572_v1 }
0x1414   :  { %v574_v4 = vpop.xlane.xlu0 %573 }
0x1415   :  { %vm575_vm8 = vcmp.eq.f32.partialorder %v570_v10, %v574_v4  ;;  %vm576_vm9 = vcmp.eq.f32.partialorder %v571_v12, %v574_v4 }
0x1416   :  { %v577_v13 = vsel %vm575_vm8, %v798_v30, 256  ;;  %v578_v8 = vsel %vm576_vm9, %v801_v31, 256 }
0x1417   :  { %vm579_vm10 = vcmp.lt.s32.totalorder %v577_v13, %v578_v8 }
0x1418   :  { %v580_v2 = vsel %vm579_vm10, %v577_v13, %v578_v8 }
0x1419   :  { %v582_v6 = vshra.s32 %v580_v2, 16  ;;  %v581_v14 = vand.u32 65535, %v580_v2 }
0x141b   :  { %v584_v9 = vcvt.s32.f32 %v582_v6  ;;  %v583_v16 = vcvt.s32.f32 %v581_v14 }
0x141d   :  { %585 = vmin.xlane.f32.xlu1 %v584_v9 }
0x14aa   :  { %v586_v15 = vpop.xlane.xlu1 %585 }
0x14ab   :  { %vm587_vm11 = vcmp.eq.f32.partialorder %v584_v9, %v586_v15  ;;  %v592_v20 = vcvt.f32.s32 %v586_v15 }
0x14ac   :  { %v588_v19 = vsel %vm587_vm11, %v583_v16, inf }
0x14ad   :  { %589 = vmin.xlane.f32.xlu0 %v588_v19  ;;  %v593_v22 = vshll.u32 %v592_v20, 16 }
0x153a   :  { %v590_v21 = vpop.xlane.xlu0 %589 }
0x153b   :  { %v591_v17 = vcvt.f32.s32 %v590_v21 }
0x153d   :  { %v594_v31 = vadd.s32 %v593_v22, %v591_v17 }
0x153f   :  { %v596_v18 = vsel %vm595_vm12, %v594_v31, %v930_v42 }
0x1540   :  { %598 = vst.msk [vmem:[#allocation8] sm:$0xff] %vm597_vm13, %v596_v18 }
0x1541   :  { %699 = shalt.err (!%p696_p0)
}
0x1542   :  { %s700_s23 = scalar_lea.hbm %s963_s3, 128 }
0x1543   :  { %p701_p1 = scmp.ne.s32.totalorder %s963_s3, %s700_s23  ;;  %p704_p2 = scmp.lt.u32.totalorder %s700_s23, %s963_s3 }
0x1545   :  { %p706_p3 = pnand %p704_p2, %p701_p1 }
0x1547   :  { %709 = shalt.err (!%p706_p3)
}
0x1548   :  { %608 = dma.vmem_to_hbm [thread:$0]  %s606_s19, 128, %s963_s3, [#allocation4]  }
0x1549   :  { %714 = dma.done.wait [#allocation4], 128  }
0x154a   :  { %715 = vsyncadd [#allocation4], 4294967168 }
0x154b   :  { %612 = vsyncpa [#allocation3], 1 }
0x154c   :  { %613 = vsyncpa [#allocation6], 1 }
0x154d   :  { %614 = vsyncpa [#allocation4], 1 }

</bundles_post_ra>
